<compile_context>
chip_gen: v7x
topology: tpu7x:2x2x1
jax: 0.10.0
libtpu: 0.0.40
codegen_flags: <defaults>
</compile_context>

<pallas_src>
import jax
import jax.numpy as jnp
from jax.experimental import pallas as pl
from jax.experimental.pallas import tpu as pltpu


def _mseg_loss_kernel(pre_ref, gt_ref, out_ref,
                      sum0_ref, sum1_ref, cnt0_ref, cnt1_ref):
    j = pl.program_id(0)

    @pl.when(j == 0)
    def _init():
        sum0_ref[...] = jnp.zeros_like(sum0_ref)
        sum1_ref[...] = jnp.zeros_like(sum1_ref)
        cnt0_ref[...] = jnp.zeros_like(cnt0_ref)
        cnt1_ref[...] = jnp.zeros_like(cnt1_ref)

    # Cast to f32 inside the kernel (inputs stream in their native dtype).
    p = pre_ref[...].astype(jnp.float32)
    y = gt_ref[...].astype(jnp.float32)

    mask1 = y == 1.0
    mask0 = y == 0.0

    # Single EUP transcendental per element: log(p) for gt==1, log(1-p) otherwise.
    # PyTorch BCELoss clamps each log term at -100.
    q = jnp.where(mask1, p, 1.0 - p)
    neg_log_q = -jnp.maximum(jnp.log(q), -100.0)

    # Pure-VPU elementwise accumulation; no per-step reduction / SMEM round trip.
    sum0_ref[...] += jnp.where(mask0, neg_log_q, 0.0)
    sum1_ref[...] += jnp.where(mask1, neg_log_q, 0.0)
    cnt0_ref[...] += mask0.astype(jnp.float32)
    cnt1_ref[...] += mask1.astype(jnp.float32)

    @pl.when(j == pl.num_programs(0) - 1)
    def _finalize():
        # Single full reduction at the very end (XLU), then the scalar combine.
        loss0 = jnp.sum(sum0_ref[...]) / jnp.sum(cnt0_ref[...])
        loss1 = jnp.sum(sum1_ref[...]) / jnp.sum(cnt1_ref[...])
        out_ref[0] = 0.5 * (loss0 + loss1)


def motion_seg_loss(mseg_pre, mseg_gt, *, tile_n=None):
    """Pallas implementation of MotionSegLoss.forward. Returns shape (1,) f32.

    Inputs are consumed in their native dtypes (e.g. bf16 predictions,
    int8/bool/f32 labels); math is done in f32 inside the kernel.
    """
    B, N = mseg_pre.shape
    assert mseg_gt.shape == (B, N)

    if tile_n is None:
        # Largest lane-dense tile (multiple of 128) that divides N, capped at
        # 2048 lanes so double-buffered blocks stay well under VMEM limits on
        # every generation (including v7x's 64 MiB).
        tile_n = N
        for cand in (2048, 1024, 512, 256, 128):
            if N % cand == 0:
                tile_n = cand
                break
    assert N % tile_n == 0, "N must be a multiple of tile_n"

    return pl.pallas_call(
        _mseg_loss_kernel,
        out_shape=jax.ShapeDtypeStruct((1,), jnp.float32),
        grid_spec=pltpu.PrefetchScalarGridSpec(
            num_scalar_prefetch=0,
            grid=(N // tile_n,),
            in_specs=[
                pl.BlockSpec((B, tile_n), lambda j: (0, j)),
                pl.BlockSpec((B, tile_n), lambda j: (0, j)),
            ],
            out_specs=pl.BlockSpec(memory_space=pltpu.MemorySpace.SMEM),
            scratch_shapes=[
                pltpu.VMEM((B, tile_n), jnp.float32),  # sum of -log(1-p), gt==0
                pltpu.VMEM((B, tile_n), jnp.float32),  # sum of -log(p),   gt==1
                pltpu.VMEM((B, tile_n), jnp.float32),  # count gt==0
                pltpu.VMEM((B, tile_n), jnp.float32),  # count gt==1
            ],
        ),
        compiler_params=pltpu.CompilerParams(
            dimension_semantics=("arbitrary",)),
    )(mseg_pre, mseg_gt)


def _reference_loss(mseg_pre, mseg_gt):
    """Pure-JAX reference mirroring torch.nn.BCELoss semantics."""
    p = mseg_pre.astype(jnp.float32)
    y = mseg_gt.astype(jnp.float32)
    log_p = jnp.maximum(jnp.log(p), -100.0)
    log_1mp = jnp.maximum(jnp.log(1.0 - p), -100.0)
    m0 = y == 0.0
    m1 = y == 1.0
    loss0 = jnp.sum(jnp.where(m0, -log_1mp, 0.0)) / jnp.sum(m0)
    loss1 = jnp.sum(jnp.where(m1, -log_p, 0.0)) / jnp.sum(m1)
    return 0.5 * (loss0 + loss1)


if __name__ == "__main__":
    key = jax.random.PRNGKey(0)
    k1, k2 = jax.random.split(key)

    B, N = 8, 512  # [B, N] motion-segmentation predictions / labels
    # Predicted probabilities in (0,1) (BCELoss expects probabilities).
    mseg_pre = jax.nn.sigmoid(jax.random.normal(k1, (B, N), dtype=jnp.float32))
    # Ground-truth binary labels {0.0, 1.0} — both classes present.
    mseg_gt = (jax.random.uniform(k2, (B, N)) > 0.5).astype(jnp.float32)

    loss = jax.block_until_ready(motion_seg_loss(mseg_pre, mseg_gt))
    ref = jax.block_until_ready(_reference_loss(mseg_pre, mseg_gt))

    assert loss.shape == (1,)
    assert jnp.allclose(loss[0], ref, rtol=1e-5, atol=1e-6), (loss, ref)

    print("KERNEL_OK")
</pallas_src>

<mosaic_0001>
module attributes {stable_mosaic.version = 11 : i64} {
  func.func @_mseg_loss_kernel(%arg0: i32, %arg1: memref<8x512xf32, #tpu.memory_space<vmem>>, %arg2: memref<8x512xf32, #tpu.memory_space<vmem>>, %arg3: memref<1xf32, #tpu.memory_space<smem>>, %arg4: memref<8x512xf32, #tpu.memory_space<vmem>>, %arg5: memref<8x512xf32, #tpu.memory_space<vmem>>, %arg6: memref<8x512xf32, #tpu.memory_space<vmem>>, %arg7: memref<8x512xf32, #tpu.memory_space<vmem>>) attributes {dimension_semantics = [#tpu.dimension_semantics<arbitrary>], iteration_bounds = array<i64: 1>, scalar_prefetch = 0 : i64, scratch_operands = 4 : i64, tpu.core_type = #tpu.core_type<tc>, window_params = [{transform_indices = @transform_0, window_bounds = array<i64: 8, 512>}, {transform_indices = @transform_1, window_bounds = array<i64: 8, 512>}, {transform_indices = @transform_2, window_bounds = array<i64: 1>}]} {
    %c0_i32 = arith.constant 0 : i32
    %0 = arith.cmpi eq, %arg0, %c0_i32 : i32
    %1 = arith.extui %0 : i1 to i32
    %c0_i32_0 = arith.constant 0 : i32
    %2 = arith.cmpi ne, %1, %c0_i32_0 : i32
    scf.if %2 {
      %cst_28 = arith.constant 0.000000e+00 : f32
      %40 = vector.broadcast %cst_28 : f32 to vector<8x512xf32>
      %c0_29 = arith.constant 0 : index
      %c0_30 = arith.constant 0 : index
      %41 = vector.load %arg4[%c0_29, %c0_30] : memref<8x512xf32, #tpu.memory_space<vmem>>, vector<8x512xf32>
      tpu.vector_store %arg4[%c0_29, %c0_30], %40 {strides = array<i32>} : memref<8x512xf32, #tpu.memory_space<vmem>>, vector<8x512xf32>,
      %cst_31 = arith.constant 0.000000e+00 : f32
      %42 = vector.broadcast %cst_31 : f32 to vector<8x512xf32>
      %c0_32 = arith.constant 0 : index
      %c0_33 = arith.constant 0 : index
      %43 = vector.load %arg5[%c0_32, %c0_33] : memref<8x512xf32, #tpu.memory_space<vmem>>, vector<8x512xf32>
      tpu.vector_store %arg5[%c0_32, %c0_33], %42 {strides = array<i32>} : memref<8x512xf32, #tpu.memory_space<vmem>>, vector<8x512xf32>,
      %cst_34 = arith.constant 0.000000e+00 : f32
      %44 = vector.broadcast %cst_34 : f32 to vector<8x512xf32>
      %c0_35 = arith.constant 0 : index
      %c0_36 = arith.constant 0 : index
      %45 = vector.load %arg6[%c0_35, %c0_36] : memref<8x512xf32, #tpu.memory_space<vmem>>, vector<8x512xf32>
      tpu.vector_store %arg6[%c0_35, %c0_36], %44 {strides = array<i32>} : memref<8x512xf32, #tpu.memory_space<vmem>>, vector<8x512xf32>,
      %cst_37 = arith.constant 0.000000e+00 : f32
      %46 = vector.broadcast %cst_37 : f32 to vector<8x512xf32>
      %c0_38 = arith.constant 0 : index
      %c0_39 = arith.constant 0 : index
      %47 = vector.load %arg7[%c0_38, %c0_39] : memref<8x512xf32, #tpu.memory_space<vmem>>, vector<8x512xf32>
      tpu.vector_store %arg7[%c0_38, %c0_39], %46 {strides = array<i32>} : memref<8x512xf32, #tpu.memory_space<vmem>>, vector<8x512xf32>,
    } else {
    }
    %c0 = arith.constant 0 : index
    %c0_1 = arith.constant 0 : index
    %3 = vector.load %arg1[%c0, %c0_1] : memref<8x512xf32, #tpu.memory_space<vmem>>, vector<8x512xf32>
    %c0_2 = arith.constant 0 : index
    %c0_3 = arith.constant 0 : index
    %4 = vector.load %arg2[%c0_2, %c0_3] : memref<8x512xf32, #tpu.memory_space<vmem>>, vector<8x512xf32>
    %cst = arith.constant 1.000000e+00 : f32
    %5 = vector.broadcast %cst : f32 to vector<8x512xf32>
    %6 = arith.cmpf oeq, %4, %5 : vector<8x512xf32>
    %cst_4 = arith.constant 0.000000e+00 : f32
    %7 = vector.broadcast %cst_4 : f32 to vector<8x512xf32>
    %8 = arith.cmpf oeq, %4, %7 : vector<8x512xf32>
    %cst_5 = arith.constant 1.000000e+00 : f32
    %9 = vector.broadcast %cst_5 : f32 to vector<8x512xf32>
    %10 = arith.subf %9, %3 : vector<8x512xf32>
    %11 = arith.select %6, %3, %10 : vector<8x512xi1>, vector<8x512xf32>
    %12 = math.log %11 : vector<8x512xf32>
    %cst_6 = arith.constant -1.000000e+02 : f32
    %13 = vector.broadcast %cst_6 : f32 to vector<8x512xf32>
    %14 = arith.maximumf %12, %13 : vector<8x512xf32>
    %cst_7 = arith.constant 0.000000e+00 : f32
    %15 = vector.broadcast %cst_7 : f32 to vector<8x512xf32>
    %16 = arith.subf %15, %14 : vector<8x512xf32>
    %c0_8 = arith.constant 0 : index
    %c0_9 = arith.constant 0 : index
    %17 = vector.load %arg4[%c0_8, %c0_9] : memref<8x512xf32, #tpu.memory_space<vmem>>, vector<8x512xf32>
    %cst_10 = arith.constant 0.000000e+00 : f32
    %18 = vector.broadcast %cst_10 : f32 to vector<8x512xf32>
    %19 = arith.select %8, %16, %18 : vector<8x512xi1>, vector<8x512xf32>
    %20 = arith.addf %17, %19 : vector<8x512xf32>
    %c0_11 = arith.constant 0 : index
    %c0_12 = arith.constant 0 : index
    %21 = vector.load %arg4[%c0_11, %c0_12] : memref<8x512xf32, #tpu.memory_space<vmem>>, vector<8x512xf32>
    tpu.vector_store %arg4[%c0_11, %c0_12], %20 {strides = array<i32>} : memref<8x512xf32, #tpu.memory_space<vmem>>, vector<8x512xf32>,
    %c0_13 = arith.constant 0 : index
    %c0_14 = arith.constant 0 : index
    %22 = vector.load %arg5[%c0_13, %c0_14] : memref<8x512xf32, #tpu.memory_space<vmem>>, vector<8x512xf32>
    %cst_15 = arith.constant 0.000000e+00 : f32
    %23 = vector.broadcast %cst_15 : f32 to vector<8x512xf32>
    %24 = arith.select %6, %16, %23 : vector<8x512xi1>, vector<8x512xf32>
    %25 = arith.addf %22, %24 : vector<8x512xf32>
    %c0_16 = arith.constant 0 : index
    %c0_17 = arith.constant 0 : index
    %26 = vector.load %arg5[%c0_16, %c0_17] : memref<8x512xf32, #tpu.memory_space<vmem>>, vector<8x512xf32>
    tpu.vector_store %arg5[%c0_16, %c0_17], %25 {strides = array<i32>} : memref<8x512xf32, #tpu.memory_space<vmem>>, vector<8x512xf32>,
    %c0_18 = arith.constant 0 : index
    %c0_19 = arith.constant 0 : index
    %27 = vector.load %arg6[%c0_18, %c0_19] : memref<8x512xf32, #tpu.memory_space<vmem>>, vector<8x512xf32>
    %28 = arith.extui %8 : vector<8x512xi1> to vector<8x512xi32>
    %29 = arith.sitofp %28 : vector<8x512xi32> to vector<8x512xf32>
    %30 = arith.addf %27, %29 : vector<8x512xf32>
    %c0_20 = arith.constant 0 : index
    %c0_21 = arith.constant 0 : index
    %31 = vector.load %arg6[%c0_20, %c0_21] : memref<8x512xf32, #tpu.memory_space<vmem>>, vector<8x512xf32>
    tpu.vector_store %arg6[%c0_20, %c0_21], %30 {strides = array<i32>} : memref<8x512xf32, #tpu.memory_space<vmem>>, vector<8x512xf32>,
    %c0_22 = arith.constant 0 : index
    %c0_23 = arith.constant 0 : index
    %32 = vector.load %arg7[%c0_22, %c0_23] : memref<8x512xf32, #tpu.memory_space<vmem>>, vector<8x512xf32>
    %33 = arith.extui %6 : vector<8x512xi1> to vector<8x512xi32>
    %34 = arith.sitofp %33 : vector<8x512xi32> to vector<8x512xf32>
    %35 = arith.addf %32, %34 : vector<8x512xf32>
    %c0_24 = arith.constant 0 : index
    %c0_25 = arith.constant 0 : index
    %36 = vector.load %arg7[%c0_24, %c0_25] : memref<8x512xf32, #tpu.memory_space<vmem>>, vector<8x512xf32>
    tpu.vector_store %arg7[%c0_24, %c0_25], %35 {strides = array<i32>} : memref<8x512xf32, #tpu.memory_space<vmem>>, vector<8x512xf32>,
    %c0_i32_26 = arith.constant 0 : i32
    %37 = arith.cmpi eq, %arg0, %c0_i32_26 : i32
    %38 = arith.extui %37 : i1 to i32
    %c0_i32_27 = arith.constant 0 : i32
    %39 = arith.cmpi ne, %38, %c0_i32_27 : i32
    scf.if %39 {
      %c0_28 = arith.constant 0 : index
      %c0_29 = arith.constant 0 : index
      %40 = vector.load %arg4[%c0_28, %c0_29] : memref<8x512xf32, #tpu.memory_space<vmem>>, vector<8x512xf32>
      %41 = vector.shape_cast %40 : vector<8x512xf32> to vector<1x8x512xf32>
      %cst_30 = arith.constant dense<0.000000e+00> : vector<1xf32>
      %42 = vector.multi_reduction <add>, %41, %cst_30 [1, 2] : vector<1x8x512xf32> to vector<1xf32>
      %43 = vector.shape_cast %42 : vector<1xf32> to vector<1x1x1xf32>
      %44 = vector.extract %43[0, 0, 0] : f32 from vector<1x1x1xf32>
      %c0_31 = arith.constant 0 : index
      %c0_32 = arith.constant 0 : index
      %45 = vector.load %arg6[%c0_31, %c0_32] : memref<8x512xf32, #tpu.memory_space<vmem>>, vector<8x512xf32>
      %46 = vector.shape_cast %45 : vector<8x512xf32> to vector<1x8x512xf32>
      %cst_33 = arith.constant dense<0.000000e+00> : vector<1xf32>
      %47 = vector.multi_reduction <add>, %46, %cst_33 [1, 2] : vector<1x8x512xf32> to vector<1xf32>
      %48 = vector.shape_cast %47 : vector<1xf32> to vector<1x1x1xf32>
      %49 = vector.extract %48[0, 0, 0] : f32 from vector<1x1x1xf32>
      %50 = arith.divf %44, %49 : f32
      %c0_34 = arith.constant 0 : index
      %c0_35 = arith.constant 0 : index
      %51 = vector.load %arg5[%c0_34, %c0_35] : memref<8x512xf32, #tpu.memory_space<vmem>>, vector<8x512xf32>
      %52 = vector.shape_cast %51 : vector<8x512xf32> to vector<1x8x512xf32>
      %cst_36 = arith.constant dense<0.000000e+00> : vector<1xf32>
      %53 = vector.multi_reduction <add>, %52, %cst_36 [1, 2] : vector<1x8x512xf32> to vector<1xf32>
      %54 = vector.shape_cast %53 : vector<1xf32> to vector<1x1x1xf32>
      %55 = vector.extract %54[0, 0, 0] : f32 from vector<1x1x1xf32>
      %c0_37 = arith.constant 0 : index
      %c0_38 = arith.constant 0 : index
      %56 = vector.load %arg7[%c0_37, %c0_38] : memref<8x512xf32, #tpu.memory_space<vmem>>, vector<8x512xf32>
      %57 = vector.shape_cast %56 : vector<8x512xf32> to vector<1x8x512xf32>
      %cst_39 = arith.constant dense<0.000000e+00> : vector<1xf32>
      %58 = vector.multi_reduction <add>, %57, %cst_39 [1, 2] : vector<1x8x512xf32> to vector<1xf32>
      %59 = vector.shape_cast %58 : vector<1xf32> to vector<1x1x1xf32>
      %60 = vector.extract %59[0, 0, 0] : f32 from vector<1x1x1xf32>
      %61 = arith.divf %55, %60 : f32
      %62 = arith.addf %50, %61 : f32
      %cst_40 = arith.constant 5.000000e-01 : f32
      %63 = arith.mulf %cst_40, %62 : f32
      %c0_41 = arith.constant 0 : index
      %64 = memref.load %arg3[%c0_41] : memref<1xf32, #tpu.memory_space<smem>>
      memref.store %63, %arg3[%c0_41] : memref<1xf32, #tpu.memory_space<smem>>
    } else {
    }
    return
  }
  func.func @transform_0(%arg0: i32) -> (i32, i32) {
    %c0_i32 = arith.constant 0 : i32
    %c0_i32_0 = arith.constant 0 : i32
    return %c0_i32, %arg0 : i32, i32
  }
  func.func @transform_1(%arg0: i32) -> (i32, i32) {
    %c0_i32 = arith.constant 0 : i32
    %c0_i32_0 = arith.constant 0 : i32
    return %c0_i32, %arg0 : i32, i32
  }
  func.func @transform_2(%arg0: i32) -> i32 {
    %c0_i32 = arith.constant 0 : i32
    %c0_i32_0 = arith.constant 0 : i32
    return %c0_i32 : i32
  }
}

</mosaic_0001>

<bundles_post_ra>
// kernel: tpu_custom_call.1
= control target key start
LH: loop header
LB: loop body
LE: loop exit
PB: predicated region body
PF: predicated region fallthrough
CT: control target
= control target key end

     0   :  { %7 = vsyncpa [#allocation7], 0  ;;  %s433_s0 = inlined_call_operand.hbm [shape: f32[8,512], index: 0, kind: input, shape index: {}]   ;;  %s434_s1 = inlined_call_operand.hbm [shape: f32[8,512], index: 1, kind: input, shape index: {}]   ;;  %s435_s2 = inlined_call_operand.hbm [shape: f32[1], index: 2, kind: output, shape index: {}]  }
   0x1   :  { %8 = vsyncpa [#allocation10], 0 }
   0x2   :  { %9 = vsyncpa [#allocation8], 0  ;;  %s358_s9 = smov [#allocation6]   ;;  %s359_s11 = smov [#allocation9]  }
   0x3   :  { %s16_s10 = sshll.u32 %s358_s9, 4  ;;  %s26_s12 = sshll.u32 %s359_s11, 4  ;;  %s17_s10 = int_to_ptr.vmem [resolvable:$true] %s16_s10  ;;  %s27_s12 = int_to_ptr.vmem [resolvable:$true] %s26_s12 }
   0x4   :  { %s298_s15 = scalar_lea.hbm %s433_s0, 512 }
   0x5   :  { %p299_p0 = scmp.ne.s32.totalorder %s433_s0, %s298_s15  ;;  %p302_p1 = scmp.lt.u32.totalorder %s298_s15, %s433_s0 }
   0x7   :  { %p304_p2 = pnand %p302_p1, %p299_p0 }
   0x9   :  { %307 = shalt.err (!%p304_p2)
}
   0xa   :  { %s308_s20 = scalar_lea.vmem %s17_s10, 512  ;;  %p313_p4 = scmp.lt.s32.totalorder %s17_s10, %s17_s10 }
   0xb   :  { %p309_p3 = scmp.ne.s32.totalorder %s17_s10, %s308_s20  ;;  %p314_p5 = scmp.lt.s32.totalorder %s308_s20, %s308_s20 }
   0xd   :  { %p315_p6 = por %p314_p5, %p313_p4 }
   0xf   :  { %p316_p7 = pnand %p315_p6, %p309_p3 }
  0x11   :  { %319 = shalt.err (!%p316_p7)
}
  0x12   :  { %19 = dma.hbm_to_vmem [thread:$0]  %s433_s0, 512, %s17_s10, [#allocation7]  }
  0x13   :  { %s320_s25 = scalar_lea.hbm %s434_s1, 512 }
  0x14   :  { %p321_p8 = scmp.ne.s32.totalorder %s434_s1, %s320_s25  ;;  %p324_p9 = scmp.lt.u32.totalorder %s320_s25, %s434_s1 }
  0x16   :  { %p326_p10 = pnand %p324_p9, %p321_p8 }
  0x18   :  { %329 = shalt.err (!%p326_p10)
}
  0x19   :  { %s330_s30 = scalar_lea.vmem %s27_s12, 512  ;;  %p335_p12 = scmp.lt.s32.totalorder %s27_s12, %s27_s12 }
  0x1a   :  { %p331_p11 = scmp.ne.s32.totalorder %s27_s12, %s330_s30  ;;  %p336_p13 = scmp.lt.s32.totalorder %s330_s30, %s330_s30 }
  0x1c   :  { %p337_p0 = por %p336_p13, %p335_p12 }
  0x1e   :  { %p338_p1 = pnand %p337_p0, %p331_p11 }
  0x20   :  { %341 = shalt.err (!%p338_p1)
}
  0x21   :  { %29 = dma.hbm_to_vmem [thread:$0]  %s434_s1, 512, %s27_s12, [#allocation10]  }
  0x22   :  { %352 = dma.done.wait [#allocation7], 512  }
  0x23   :  { %353 = vsyncadd [#allocation7], 4294966784 }
  0x24   :  { %354 = dma.done.wait [#allocation10], 512  }
  0x25   :  { %355 = vsyncadd [#allocation10], 4294966784  ;;  %v56_v0 = vld [vmem:[#allocation6] sm:$0xff]  ;;  %v57_v1 = vld [vmem:[#allocation6 + $0x8] sm:$0xff]  ;;  %v360_v24 = vmov 0.0   ;;  %s342_s15 = scalar_lea.hbm %s435_s2, 16 }
  0x26   :  { %v58_v2 = vld [vmem:[#allocation6 + $0x10] sm:$0xff]  ;;  %v59_v3 = vld [vmem:[#allocation6 + $0x18] sm:$0xff]  ;;  %v60_v4 = vld [vmem:[#allocation9] sm:$0xff]  ;;  %v72_v6 = vsub.f32 1.0, %v56_v0  ;;  %v73_v7 = vsub.f32 1.0, %v57_v1  ;;  %p343_p2 = scmp.ne.s32.totalorder %s435_s2, %s342_s15  ;;  %p346_p3 = scmp.lt.u32.totalorder %s342_s15, %s435_s2 }
  0x27   :  { %v61_v5 = vld [vmem:[#allocation9 + $0x8] sm:$0xff]  ;;  %v74_v8 = vsub.f32 1.0, %v58_v2  ;;  %v62_v9 = vld [vmem:[#allocation9 + $0x10] sm:$0xff]  ;;  %v63_v10 = vld [vmem:[#allocation9 + $0x18] sm:$0xff]  ;;  %vm64_vm0 = vcmp.eq.f32.partialorder %v60_v4, 1.0  ;;  %v75_v11 = vsub.f32 1.0, %v59_v3 }
  0x28   :  { %vm65_vm1 = vcmp.eq.f32.partialorder %v61_v5, 1.0  ;;  %vm66_vm2 = vcmp.eq.f32.partialorder %v62_v9, 1.0  ;;  %vm67_vm3 = vcmp.eq.f32.partialorder %v63_v10, 1.0  ;;  %v76_v12 = vsel %vm64_vm0, %v56_v0, %v72_v6  ;;  %p348_p4 = pnand %p346_p3, %p343_p2 }
  0x29   :  { %v77_v13 = vsel %vm65_vm1, %v57_v1, %v73_v7  ;;  %v78_v14 = vsel %vm66_vm2, %v58_v2, %v74_v8  ;;  %286 = vlog2.f32 %v76_v12  ;;  %v79_v15 = vsel %vm67_vm3, %v59_v3, %v75_v11 }
  0x2a   :  { %288 = vlog2.f32 %v77_v13  ;;  %vm68_vm4 = vcmp.eq.f32.partialorder %v60_v4, 0.0  ;;  %vm69_vm5 = vcmp.eq.f32.partialorder %v61_v5, 0.0  ;;  %v266_v29 = vsel %vm64_vm0, 1.0, %v360_v24 }
  0x2b   :  { %290 = vlog2.f32 %v78_v14  ;;  %v262_v25 = vsel %vm68_vm4, 1.0, %v360_v24  ;;  %v263_v26 = vsel %vm69_vm5, 1.0, %v360_v24  ;;  %v267_v30 = vsel %vm65_vm1, 1.0, %v360_v24 }
  0x2c   :  { %292 = vlog2.f32 %v79_v15  ;;  %vm70_vm6 = vcmp.eq.f32.partialorder %v62_v9, 0.0  ;;  %vm71_vm7 = vcmp.eq.f32.partialorder %v63_v10, 0.0  ;;  %v191_v36 = vadd.f32 %v263_v26, %v262_v25 }
  0x2d   :  { %v264_v35 = vsel %vm70_vm6, 1.0, %v360_v24  ;;  %v227_v40 = vadd.f32 %v267_v30, %v266_v29  ;;  %v268_v44 = vsel %vm66_vm2, 1.0, %v360_v24  ;;  %v265_v55 = vsel %vm71_vm7, 1.0, %v360_v24 }
  0x2e   :  { %v192_v52 = vadd.f32 %v264_v35, %v191_v36  ;;  %v269_v56 = vsel %vm67_vm3, 1.0, %v360_v24 }
  0x2f   :  { %v228_v54 = vadd.f32 %v268_v44, %v227_v40 }
  0x30   :  { %v193_v59 = vadd.f32 %v265_v55, %v192_v52 }
  0x31   :  { %v229_v60 = vadd.f32 %v269_v56, %v228_v54 }
  0x33   :  { %v287_v16 = vpop.eup %286 }
  0x34   :  { %v289_v17 = vpop.eup %288  ;;  %v81_v18 = vmul.f32 0.6931472, %v287_v16 }
  0x35   :  { %v291_v19 = vpop.eup %290  ;;  %v83_v20 = vmul.f32 0.6931472, %v289_v17 }
  0x36   :  { %v293_v21 = vpop.eup %292  ;;  %v85_v22 = vmul.f32 0.6931472, %v291_v19  ;;  %v88_v23 = vmax.f32 %v81_v18, -100.0 }
  0x37   :  { %v87_v27 = vmul.f32 0.6931472, %v293_v21  ;;  %v89_v28 = vmax.f32 %v83_v20, -100.0 }
  0x38   :  { %v90_v31 = vmax.f32 %v85_v22, -100.0  ;;  %v92_v32 = vsub.f32 0.0, %v88_v23 }
  0x39   :  { %v91_v33 = vmax.f32 %v87_v27, -100.0  ;;  %v93_v34 = vsub.f32 0.0, %v89_v28 }
  0x3a   :  { %v94_v37 = vsub.f32 0.0, %v90_v31  ;;  %v100_v38 = vsel %vm68_vm4, %v92_v32, 0.0  ;;  %v116_v39 = vsel %vm64_vm0, %v92_v32, 0.0 }
  0x3b   :  { %v95_v41 = vsub.f32 0.0, %v91_v33  ;;  %v101_v42 = vsel %vm69_vm5, %v93_v34, 0.0  ;;  %v117_v43 = vsel %vm65_vm1, %v93_v34, 0.0 }
  0x3c   :  { %v102_v45 = vsel %vm70_vm6, %v94_v37, 0.0  ;;  %v175_v46 = vadd.f32 %v101_v42, %v100_v38  ;;  %v118_v47 = vsel %vm66_vm2, %v94_v37, 0.0  ;;  %v211_v48 = vadd.f32 %v117_v43, %v116_v39 }
  0x3d   :  { %v103_v49 = vsel %vm71_vm7, %v95_v41, 0.0  ;;  %v119_v50 = vsel %vm67_vm3, %v95_v41, 0.0 }
  0x3e   :  { %v176_v51 = vadd.f32 %v175_v46, %v102_v45  ;;  %v212_v53 = vadd.f32 %v211_v48, %v118_v47 }
  0x40   :  { %v177_v57 = vadd.f32 %v176_v51, %v103_v49  ;;  %v213_v58 = vadd.f32 %v212_v53, %v119_v50 }
  0x42   :  { %178 = vadd.xlane.f32.xlu0 %v177_v57  ;;  %214 = vadd.xlane.f32.xlu1 %v213_v58 }
  0x46   :  { %194 = vadd.xlane.f32.xlu0 %v193_v59  ;;  %230 = vadd.xlane.f32.xlu1 %v229_v60 }
  0xcf   :  { %v179_v61 = vpop.xlane.xlu0 %178  ;;  %v215_v11 = vpop.xlane.xlu1 %214 }
  0xd0   :  { %v180_v62 = vrot.slane %v179_v61, 4  ;;  %v216_v13 = vrot.slane %v215_v11, 4 }
  0xd2   :  { %v181_v63 = vadd.f32 %v180_v62, %v179_v61  ;;  %v217_v15 = vadd.f32 %v216_v13, %v215_v11 }
  0xd3   :  { %v195_v0 = vpop.xlane.xlu0 %194  ;;  %v231_v12 = vpop.xlane.xlu1 %230 }
  0xd4   :  { %v182_v1 = vrot.slane %v181_v63, 2  ;;  %v196_v2 = vrot.slane %v195_v0, 4  ;;  %v232_v14 = vrot.slane %v231_v12, 4  ;;  %v218_v17 = vrot.slane %v217_v15, 2 }
  0xd6   :  { %v197_v3 = vadd.f32 %v196_v2, %v195_v0  ;;  %v183_v4 = vadd.f32 %v182_v1, %v181_v63  ;;  %v233_v16 = vadd.f32 %v232_v14, %v231_v12  ;;  %v219_v20 = vadd.f32 %v218_v17, %v217_v15 }
  0xd8   :  { %v198_v5 = vrot.slane %v197_v3, 2  ;;  %v184_v6 = vrot.slane %v183_v4, 1  ;;  %v234_v18 = vrot.slane %v233_v16, 2  ;;  %v220_v22 = vrot.slane %v219_v20, 1 }
  0xda   :  { %v199_v7 = vadd.f32 %v198_v5, %v197_v3  ;;  %v185_v8 = vadd.f32 %v184_v6, %v183_v4  ;;  %v235_v21 = vadd.f32 %v234_v18, %v233_v16  ;;  %v221_v25 = vadd.f32 %v220_v22, %v219_v20 }
  0xdc   :  { %270 = vpush %v185_v8  ;;  %v200_v9 = vrot.slane %v199_v7, 1  ;;  %v236_v23 = vrot.slane %v235_v21, 1 }
  0xde   :  { %v201_v10 = vadd.f32 %v200_v9, %v199_v7  ;;  %v237_v26 = vadd.f32 %v236_v23, %v235_v21 }
  0xe0   :  { %272 = vpush %v201_v10 }
 0x10d   :  { %s271_s1 = spop %270 }
 0x111   :  { %s273_s4 = spop %272 }
 0x112   :  { %v203_v19 = vstv %s273_s4 }
 0x113   :  { %294 = vrcp.f32 %v203_v19 }
 0x11d   :  { %v295_v24 = vpop.eup %294 }
 0x11e   :  { %274 = vpush %v295_v24 }
 0x11f   :  { %276 = vpush %v221_v25 }
 0x120   :  { %278 = vpush %v237_v26 }
 0x14f   :  { %s275_s5 = spop %274 }
 0x150   :  { %s277_s6 = spop %276  ;;  %s206_s8 = smul.f32 %s275_s5, %s271_s1 }
 0x151   :  { %s279_s7 = spop %278 }
 0x152   :  { %v239_v27 = vstv %s279_s7 }
 0x153   :  { %296 = vrcp.f32 %v239_v27 }
 0x15d   :  { %v297_v28 = vpop.eup %296 }
 0x15e   :  { %280 = vpush %v297_v28 }
 0x18f   :  { %s281_s9 = spop %280 }
 0x190   :  { %s242_s10 = smul.f32 %s281_s9, %s277_s6 }
 0x192   :  { %s243_s11 = sadd.f32 %s242_s10, %s206_s8 }
 0x194   :  { %s244_s12 = smul.f32 0.5, %s243_s11 }
 0x196   :  { %246 = sst [smem:[#allocation11]] %s244_s12 }
 0x197   :  { %351 = shalt.err (!%p348_p4)
}
 0x198   :  { %s361_s20 = smov [#allocation11]  }
 0x199   :  { %254 = dma.smem_to_hbm %s361_s20, 16, %s435_s2, [#allocation8]  }
 0x19a   :  { %356 = dma.done.wait [#allocation8], 16  }
 0x19b   :  { %357 = vsyncadd [#allocation8], 4294967280 }
 0x19c   :  { %258 = sfence }
 0x19d   :  { %259 = vsyncpa [#allocation7], 1 }
 0x19e   :  { %260 = vsyncpa [#allocation10], 1 }
 0x19f   :  { %261 = vsyncpa [#allocation8], 1 }

</bundles_post_ra>
